<compile_context>
chip_gen: v5e
topology: v5e:2x2
jax: 0.10.0
libtpu: 0.0.40
codegen_flags: <defaults>
</compile_context>

<pallas_src>
import functools

import jax
import jax.numpy as jnp
from jax import lax
from jax.experimental import pallas as pl
from jax.experimental.pallas import tpu as pltpu

_LANE = 128


def _physical_vmem_bytes():
    """Per-core VMEM capacity; conservative (v7x, 64 MiB) fallback if unknown."""
    try:
        info = pltpu.get_tpu_info()
        cap = getattr(info, "vmem_capacity_bytes", None)
        if cap:
            return int(cap)
    except Exception:
        pass
    return 64 << 20


def _vmem_caps():
    phys = _physical_vmem_bytes()
    # Scoped-VMEM ceiling ~3/4 of physical, leaving headroom for Mosaic
    # internal scratch / weight buffers: ~48 MiB on v7x, ~96 MiB on v5e/v6e.
    cap = min(phys * 3 // 4, 96 << 20)
    budget = max(8 << 20, cap - (8 << 20))   # what the pipelined blocks may use
    return cap, budget


# ----------------------------- fused (single pass) ---------------------------

def _se_fused_kernel(x_ref, w1_ref, w2_ref, o_ref, *, inv_hw):
    # Squeeze: one f32 read for the spatial sum; the f32 temporary is not kept
    # live across the excitation chain (the scale below re-reads x_ref).
    ssum = jnp.sum(x_ref[...].astype(jnp.float32), axis=-1)               # (Bt, C)
    avg = ssum * inv_hw
    hid = lax.dot_general(avg, w1_ref[...], (((1,), (1,)), ((), ())),
                          preferred_element_type=jnp.float32)             # (Bt, Cr)
    hid = jnp.maximum(hid, 0.0)
    s = lax.dot_general(hid, w2_ref[...], (((1,), (1,)), ((), ())),
                        preferred_element_type=jnp.float32)               # (Bt, C)
    s = jax.nn.sigmoid(s).astype(o_ref.dtype)
    # Scale in the input dtype (cheap VMEM re-read; fewer VALU ops for bf16).
    o_ref[...] = x_ref[...] * s[:, :, None]


def _se_fused(xr, w1, w2, vmem_cap, budget, in_place):
    B, C, HW = xr.shape
    Cr = w1.shape[0]
    itemsize = xr.dtype.itemsize
    per_sample = C * HW * itemsize
    # in+out double-buffered (4x) plus f32 temporaries for the reduction.
    per_sample_cost = 4 * per_sample + 2 * C * HW * 4
    bt = max(1, min(B, budget // per_sample_cost))
    if B > 1:                                   # >= 2 grid steps: megacore + overlap
        bt = min(bt, pl.cdiv(B, 4))
    nb = pl.cdiv(B, bt)                         # ragged batch: partial last block
    block_bytes = bt * per_sample
    vmem_limit = int(min(max(4 * block_bytes + 2 * bt * C * HW * 4 + (8 << 20),
                             32 << 20), vmem_cap))
    cost = pl.CostEstimate(
        flops=int(2 * B * C * HW + 4 * B * C * Cr),
        transcendentals=int(B * C),
        bytes_accessed=int(2 * B * C * HW * itemsize
                           + (w1.size + w2.size) * w1.dtype.itemsize))
    kernel = functools.partial(_se_fused_kernel, inv_hw=1.0 / float(HW))
    return pl.pallas_call(
        kernel,
        out_shape=jax.ShapeDtypeStruct((B, C, HW), xr.dtype),
        grid=(nb,),
        in_specs=[
            pl.BlockSpec((bt, C, HW), lambda b: (b, 0, 0)),
            pl.BlockSpec((Cr, C), lambda b: (0, 0)),    # weights: constant index
            pl.BlockSpec((C, Cr), lambda b: (0, 0)),    #  -> stay VMEM-resident
        ],
        out_specs=pl.BlockSpec((bt, C, HW), lambda b: (b, 0, 0)),
        compiler_params=pltpu.CompilerParams(
            dimension_semantics=("parallel",),
            vmem_limit_bytes=vmem_limit),
        cost_estimate=cost,
        input_output_aliases=({0: 0} if in_place else {}),
    )(xr, w1, w2)


# --------------------------- tiled (two-pass) path ----------------------------

def _se_reduce_gate_kernel(x_ref, w1_ref, w2_ref, gate_ref, sum_sc,
                           *, inv_hw, thw, hw_true):
    hi = pl.program_id(1)

    @pl.when(hi == 0)
    def _():
        sum_sc[...] = jnp.zeros_like(sum_sc)

    x = x_ref[...].astype(jnp.float32)                        # (1, C, thw)
    if hw_true % thw != 0:
        # Mask the ragged tail of the final lane tile (lanes past HW are garbage).
        lane = lax.broadcasted_iota(jnp.int32, x.shape, 2)
        x = jnp.where(lane < (hw_true - hi * thw), x, 0.0)
    sum_sc[...] += jnp.sum(x, axis=-1)                         # (1, C)

    @pl.when(hi == pl.num_programs(1) - 1)
    def _():
        avg = sum_sc[...] * inv_hw                             # (1, C)
        hid = jnp.maximum(
            lax.dot_general(avg, w1_ref[...], (((1,), (1,)), ((), ())),
                            preferred_element_type=jnp.float32), 0.0)
        s = jax.nn.sigmoid(
            lax.dot_general(hid, w2_ref[...], (((1,), (1,)), ((), ())),
                            preferred_element_type=jnp.float32))
        gate_ref[...] = s[:, :, None].astype(gate_ref.dtype)   # (1, C, 1)


def _se_scale_kernel(gate_ref, x_ref, o_ref):
    # Pure elementwise scale; out-of-range lanes of a ragged final tile are
    # dropped by the pipeline's masked writeback, so no mask is needed here.
    o_ref[...] = x_ref[...] * gate_ref[...]


def _se_tiled(xr, w1, w2, vmem_cap, budget, in_place, tile_hw=None):
    B, C, HW = xr.shape
    Cr = w1.shape[0]
    itemsize = xr.dtype.itemsize
    # Lane tile: as large as the budget allows (lane-dense vst), multiple of 128.
    if tile_hw is None:
        thw = (budget // (C * (4 * itemsize + 4))) // _LANE * _LANE
        thw = max(_LANE, thw)
    else:
        thw = tile_hw                 # test knob; must be a multiple of 128
    thw = min(thw, HW)                # full-dim block if the whole row fits
    nhw = pl.cdiv(HW, thw)            # ragged HW: partial, masked last tile
    block_bytes = C * thw * itemsize
    vmem_limit = int(min(max(4 * block_bytes + 2 * C * thw * 4 + (8 << 20),
                             32 << 20), vmem_cap))
    inv_hw = 1.0 / float(HW)

    # Pass 1: per-(batch, channel) sums over lane tiles; the tiny gate is
    # emitted once per batch at the last tile.
    gate = pl.pallas_call(
        functools.partial(_se_reduce_gate_kernel, inv_hw=inv_hw, thw=thw,
                          hw_true=HW),
        out_shape=jax.ShapeDtypeStruct((B, C, 1), xr.dtype),
        grid=(B, nhw),
        in_specs=[
            pl.BlockSpec((1, C, thw), lambda b, h: (b, 0, h)),
            pl.BlockSpec((Cr, C), lambda b, h: (0, 0)),
            pl.BlockSpec((C, Cr), lambda b, h: (0, 0)),
        ],
        out_specs=pl.BlockSpec((1, C, 1), lambda b, h: (b, 0, 0)),
        scratch_shapes=[pltpu.VMEM((1, C), jnp.float32)],
        compiler_params=pltpu.CompilerParams(
            dimension_semantics=("parallel", "arbitrary"),
            vmem_limit_bytes=vmem_limit),
        cost_estimate=pl.CostEstimate(
            flops=int(B * C * HW + 4 * B * C * Cr),
            transcendentals=int(B * C),
            bytes_accessed=int(B * C * HW * itemsize)),
    )(xr, w1, w2)

    # Pass 2: elementwise scale with lane-dense blocks (gate only; no matmuls,
    # sigmoid or weight operands in the hot loop).
    return pl.pallas_call(
        _se_scale_kernel,
        out_shape=jax.ShapeDtypeStruct((B, C, HW), xr.dtype),
        grid=(B, nhw),
        in_specs=[
            pl.BlockSpec((1, C, 1), lambda b, h: (b, 0, 0)),
            pl.BlockSpec((1, C, thw), lambda b, h: (b, 0, h)),
        ],
        out_specs=pl.BlockSpec((1, C, thw), lambda b, h: (b, 0, h)),
        compiler_params=pltpu.CompilerParams(
            dimension_semantics=("parallel", "parallel"),
            vmem_limit_bytes=vmem_limit),
        cost_estimate=pl.CostEstimate(
            flops=int(B * C * HW),
            transcendentals=0,
            bytes_accessed=int(2 * B * C * HW * itemsize)),
        input_output_aliases=({1: 0} if in_place else {}),
    )(gate, xr)


# --------------------------------- wrapper ------------------------------------

def se_block_pallas(x, w1, w2, *, force_tiled=False, in_place=False,
                    tile_hw=None):
    """SE block forward.  x: (B, C, H, W); w1: (C//r, C); w2: (C, C//r)
    (PyTorch nn.Linear weight layouts, bias-free).

    in_place=True adds input_output_aliases so the result may overwrite x's
    buffer when the caller donates it (halves HBM footprint); off by default
    so x remains valid after the call.
    """
    B, C, H, W = x.shape
    HW = H * W
    xr = x.reshape(B, C, HW)          # free view; no host-side pad/slice
    vmem_cap, budget = _vmem_caps()
    itemsize = x.dtype.itemsize
    per_sample_cost = 4 * C * HW * itemsize + 2 * C * HW * 4
    if per_sample_cost <= budget and not force_tiled:
        out = _se_fused(xr, w1, w2, vmem_cap, budget, in_place)
    else:
        out = _se_tiled(xr, w1, w2, vmem_cap, budget, in_place, tile_hw=tile_hw)
    return out.reshape(B, C, H, W)


def se_block_ref(x, w1, w2):
    avg = jnp.mean(x, axis=(2, 3))                 # (B, C)
    h = jnp.maximum(avg @ w1.T, 0.0)               # (B, C//r)
    s = jax.nn.sigmoid(h @ w2.T)                   # (B, C)
    return x * s[:, :, None, None]


def _check(name, out, ref):
    assert out.shape == ref.shape, name
    assert jnp.allclose(out, ref, atol=1e-5, rtol=1e-5), name


if __name__ == "__main__":
    key = jax.random.PRNGKey(0)
    C, ratio = 32, 4
    Cr = C // ratio
    k1, k2, kx = jax.random.split(key, 3)
    # nn.Linear(channel, channel//ratio, bias=False) / (channel//ratio, channel)
    w1 = jax.random.normal(k1, (Cr, C), dtype=jnp.float32) * (1.0 / jnp.sqrt(C))
    w2 = jax.random.normal(k2, (C, Cr), dtype=jnp.float32) * (1.0 / jnp.sqrt(Cr))

    # 1) fused path, lane-aligned spatial size (HW = 256, grid of 2 steps).
    x1 = jax.random.normal(kx, (2, C, 16, 16), dtype=jnp.float32)
    out = jax.block_until_ready(se_block_pallas(x1, w1, w2))
    _check("fused", out, se_block_ref(x1, w1, w2))

    # 2) fused path, ragged HW (144 lanes -> masked tail stores, no padding).
    x2 = jax.random.normal(kx, (2, C, 12, 12), dtype=jnp.float32)
    out = jax.block_until_ready(se_block_pallas(x2, w1, w2))
    _check("fused_ragged_hw", out, se_block_ref(x2, w1, w2))

    # 3) fused path, ragged batch (B=5, bt=2 -> partial last batch block).
    x3 = jax.random.normal(kx, (5, C, 8, 8), dtype=jnp.float32)
    out = jax.block_until_ready(se_block_pallas(x3, w1, w2))
    _check("fused_ragged_batch", out, se_block_ref(x3, w1, w2))

    # 4) tiled two-pass path with a partial final lane tile (144 = 128 + 16).
    out = jax.block_until_ready(
        se_block_pallas(x2, w1, w2, force_tiled=True, tile_hw=128))
    _check("tiled_ragged_hw", out, se_block_ref(x2, w1, w2))

    print("KERNEL_OK")
</pallas_src>

<mosaic_0001>
module attributes {stable_mosaic.version = 11 : i64} {
  func.func @_se_fused_kernel(%arg0: i32, %arg1: memref<1x32x256xf32, #tpu.memory_space<vmem>>, %arg2: memref<8x32xf32, #tpu.memory_space<vmem>>, %arg3: memref<32x8xf32, #tpu.memory_space<vmem>>, %arg4: memref<1x32x256xf32, #tpu.memory_space<vmem>>) attributes {dimension_semantics = [#tpu.dimension_semantics<parallel>], iteration_bounds = array<i64: 2>, scalar_prefetch = 0 : i64, scratch_operands = 0 : i64, tpu.core_type = #tpu.core_type<tc>, window_params = [{transform_indices = @transform_0, window_bounds = array<i64: 1, 32, 256>}, {pipeline_mode = #tpu.pipeline_mode<synchronous>, transform_indices = @transform_1, window_bounds = array<i64: 8, 32>}, {pipeline_mode = #tpu.pipeline_mode<synchronous>, transform_indices = @transform_2, window_bounds = array<i64: 32, 8>}, {transform_indices = @transform_3, window_bounds = array<i64: 1, 32, 256>}]} {
    %c0 = arith.constant 0 : index
    %c0_0 = arith.constant 0 : index
    %c0_1 = arith.constant 0 : index
    %0 = vector.load %arg1[%c0, %c0_0, %c0_1] : memref<1x32x256xf32, #tpu.memory_space<vmem>>, vector<1x32x256xf32>
    %cst = arith.constant dense<0.000000e+00> : vector<1x32xf32>
    %1 = vector.multi_reduction <add>, %0, %cst [2] : vector<1x32x256xf32> to vector<1x32xf32>
    %cst_2 = arith.constant 3.906250e-03 : f32
    %2 = vector.broadcast %cst_2 : f32 to vector<1x32xf32>
    %3 = arith.mulf %1, %2 : vector<1x32xf32>
    %c0_3 = arith.constant 0 : index
    %c0_4 = arith.constant 0 : index
    %4 = vector.load %arg2[%c0_3, %c0_4] : memref<8x32xf32, #tpu.memory_space<vmem>>, vector<8x32xf32>
    %cst_5 = arith.constant dense<0.000000e+00> : vector<1x8xf32>
    %5 = tpu.matmul %3, %4, %cst_5 {dimension_numbers = #tpu.dot_dimension_numbers<[1], [1], [0], [0], [0, 0, 1, 0], [], []>} : vector<1x32xf32>, vector<8x32xf32>, vector<1x8xf32> -> vector<1x8xf32>
    %cst_6 = arith.constant 0.000000e+00 : f32
    %6 = vector.broadcast %cst_6 : f32 to vector<1x8xf32>
    %7 = arith.maximumf %5, %6 : vector<1x8xf32>
    %c0_7 = arith.constant 0 : index
    %c0_8 = arith.constant 0 : index
    %8 = vector.load %arg3[%c0_7, %c0_8] : memref<32x8xf32, #tpu.memory_space<vmem>>, vector<32x8xf32>
    %cst_9 = arith.constant dense<0.000000e+00> : vector<1x32xf32>
    %9 = tpu.matmul %7, %8, %cst_9 {dimension_numbers = #tpu.dot_dimension_numbers<[1], [1], [0], [0], [0, 0, 1, 0], [], []>} : vector<1x8xf32>, vector<32x8xf32>, vector<1x32xf32> -> vector<1x32xf32>
    %10 = arith.negf %9 : vector<1x32xf32>
    %11 = math.exp %10 : vector<1x32xf32>
    %cst_10 = arith.constant 1.000000e+00 : f32
    %12 = vector.broadcast %cst_10 : f32 to vector<1x32xf32>
    %13 = arith.addf %12, %11 : vector<1x32xf32>
    %14 = arith.divf %12, %13 : vector<1x32xf32>
    %c0_11 = arith.constant 0 : index
    %c0_12 = arith.constant 0 : index
    %c0_13 = arith.constant 0 : index
    %15 = vector.load %arg1[%c0_11, %c0_12, %c0_13] : memref<1x32x256xf32, #tpu.memory_space<vmem>>, vector<1x32x256xf32>
    %16 = vector.shape_cast %14 : vector<1x32xf32> to vector<1x32x1xf32>
    %17 = vector.broadcast %16 : vector<1x32x1xf32> to vector<1x32x256xf32>
    %18 = arith.mulf %15, %17 : vector<1x32x256xf32>
    %c0_14 = arith.constant 0 : index
    %c0_15 = arith.constant 0 : index
    %c0_16 = arith.constant 0 : index
    %19 = vector.load %arg4[%c0_14, %c0_15, %c0_16] : memref<1x32x256xf32, #tpu.memory_space<vmem>>, vector<1x32x256xf32>
    tpu.vector_store %arg4[%c0_14, %c0_15, %c0_16], %18 {strides = array<i32>} : memref<1x32x256xf32, #tpu.memory_space<vmem>>, vector<1x32x256xf32>,
    return
  }
  func.func @transform_0(%arg0: i32) -> (i32, i32, i32) {
    %c0_i32 = arith.constant 0 : i32
    %c0_i32_0 = arith.constant 0 : i32
    %c0_i32_1 = arith.constant 0 : i32
    return %arg0, %c0_i32, %c0_i32_0 : i32, i32, i32
  }
  func.func @transform_1(%arg0: i32) -> (i32, i32) {
    %c0_i32 = arith.constant 0 : i32
    %c0_i32_0 = arith.constant 0 : i32
    %c0_i32_1 = arith.constant 0 : i32
    return %c0_i32, %c0_i32_0 : i32, i32
  }
  func.func @transform_2(%arg0: i32) -> (i32, i32) {
    %c0_i32 = arith.constant 0 : i32
    %c0_i32_0 = arith.constant 0 : i32
    %c0_i32_1 = arith.constant 0 : i32
    return %c0_i32, %c0_i32_0 : i32, i32
  }
  func.func @transform_3(%arg0: i32) -> (i32, i32, i32) {
    %c0_i32 = arith.constant 0 : i32
    %c0_i32_0 = arith.constant 0 : i32
    %c0_i32_1 = arith.constant 0 : i32
    return %arg0, %c0_i32, %c0_i32_0 : i32, i32, i32
  }
}

</mosaic_0001>

<bundles_post_ra>
// kernel: tpu_custom_call.1
= control target key start
LH: loop header
LB: loop body
LE: loop exit
PB: predicated region body
PF: predicated region fallthrough
CT: control target
= control target key end

     0   :  { %8 = vsyncpa [#allocation3], 0  ;;  %s841_s0 = inlined_call_operand.hbm [shape: f32[2,32,256], index: 0, kind: input, shape index: {}]   ;;  %s842_s1 = inlined_call_operand.vmem [shape: f32[8,32], index: 1, kind: input, shape index: {}]   ;;  %s843_s2 = inlined_call_operand.vmem [shape: f32[32,8], index: 2, kind: input, shape index: {}]   ;;  %s844_s3 = inlined_call_operand.hbm [shape: f32[2,32,256], index: 3, kind: output, shape index: {}]  }
   0x1   :  { %10 = vsyncpa [#allocation3 + $0x1], 0 }
   0x2   :  { %11 = vsyncpa [#allocation4], 0 }
   0x3   :  { %13 = vsyncpa [#allocation4 + $0x1], 0  ;;  %s656_s12 = smov 0   ;;  %s658_s13 = smov 0  }
   0x4   :  { %s660_s14 = smov 0   ;;  %s662_s15 = smov 0  }
   0x5 LB: > { %s677_s16 = sadd.s32 4294967295, %s630_s15   ;;  %s451_s17 = sadd.s32 4294967294, %s630_s15   ;;  %s630_s15 = sphi %s662_s15, %s854_s15   ;;  %s626_s14 = sphi %s660_s14, %s853_s14   ;;  %s622_s13 = sphi %s658_s13, %s852_s13   ;;  %s618_s12 = sphi %s656_s12, %s851_s12  }
   0x6   : > { %s681_s18 = sadd.s32 1, %s630_s15   ;;  %s26_s19 = sadd.s32 1, %s626_s14 }
   0x7   : > { %s23_s20 = ssub.s32 %s630_s15, %s681_s18  ;;  %p33_p0 = scmp.ne.s32.totalorder %s626_s14, %s622_s13 }
   0x8   : > { %p24_p1 = scmp.eq.s32.totalorder %s23_s20, 0  ;;  %p34_p2 = scmp.eq.s32.totalorder %s630_s15, 0 }
   0x9   : > { %p39_p3 = scmp.ne.s32.totalorder %s622_s13, %s618_s12  ;;  %p40_p4 = scmp.eq.s32.totalorder %s677_s16, 0 }
   0xa   : > { %s693_s21 = scalar_select %p24_p1, %s626_s14, %s26_s19  }
   0xb   : > { %p695_p5 = por %p34_p2, %p33_p0  ;;  %p699_p6 = por %p40_p4, %p39_p3 }
   0xc   : > { %p105_p7 = scmp.eq.s32.totalorder %s677_s16, 1  ;;  %p111_p8 = scmp.eq.s32.totalorder %s451_s17, 1 }
   0xd   : > { %p487_p10 = scmp.lt.s32.totalorder %s630_s15, 2  ;;  %s137_s26 = sand.u32 1, %s626_s14  }
   0xe   : > { %p706_p11 = por %p105_p7, %p33_p0  ;;  %p710_p12 = por %p111_p8, %p39_p3 }
   0xf   : > { %s473_s27 = sshll.u32 %s630_s15, 6  ;;  %s454_s28 = sshll.u32 %s137_s26, 6 }
  0x10   : > { %s146_s4 = scalar_lea.hbm %s841_s0, %s473_s27  ;;  %s141_s6 = scalar_lea.vmem [#allocation2], %s454_s28 }
  0x11   : > { %s147_s5 = sshll.u32 %s146_s4, 4  ;;  %s149_s7 = sshll.u32 %s141_s6, 4  ;;  %s148_s5 = int_to_ptr.hbm [resolvable:$true] %s147_s5  ;;  %s150_s7 = int_to_ptr.vmem [resolvable:$true] %s149_s7 }
  0x12   : > { %p721_p13 = pnand %p487_p10, %p695_p5  ;;  %p457_p0 = scmp.ge.s32.totalorder %s630_s15, 1 }
  0x13   : > { %p157_p1 = scmp.lt.s32.totalorder %s630_s15, 3  ;;  %s138_s9 = scalar_lea.sflag [#allocation3], %s137_s26 }
  0x14   : > { %s534_s10 = sshra.s32 %s148_s5, 4  ;;  %p538_p3 = pneg %p721_p13  ;;  %s535_s10 = int_to_ptr.hbm [resolvable:$true] %s534_s10 }
  0x15   : > { %s536_s11 = scalar_lea.hbm %s535_s10, 64  ;;  %s541_s20 = scalar_lea.hbm %s841_s0, 128 }
  0x16   : > { %p537_p2 = scmp.ne.s32.totalorder %s535_s10, %s536_s11  ;;  %p542_p5 = scmp.lt.s32.totalorder %s535_s10, %s841_s0 }
  0x17   : > { %p543_p8 = scmp.lt.s32.totalorder %s541_s20, %s536_s11 }
  0x18   : > { %p539_p4 = pnand %p538_p3, %p537_p2 }
  0x19   : > { %p544_p10 = por %p543_p8, %p542_p5 }
  0x1a   : > { %p540_p7 = pneg %p539_p4 }
  0x1c   : > { %p545_p9 = pnand %p544_p10, %p540_p7 }
  0x1e   : > { %548 = shalt.err (!%p545_p9)
}
  0x1f   : > { %s632_s26 = smov 256   ;;  %s633_s28 = smov 16  }
  0x20   : > { %482 = dma.hbm_to_vmem [thread:$0]  (!%p721_p13), %s148_s5, 1024, %s150_s7, %s138_s9, %s632_s26, %s632_s26, %s633_s28  }
  0x21   : > { %p158_p2 = pnand %p457_p0, %p157_p1 }
  0x22   : > { %s742_s29 = sand.u32 (!%p158_p2), 1, %s622_s13  }
  0x23   : > { %161 = sbr.rel (%p158_p2) target bundleno = 583 (0x247), region = 32  ;;  %s458_s30 = sshll.u32 (!%p158_p2), %s742_s29, 6 }
  0x24   : > { %s164_s4 = scalar_lea.sflag (!%p158_p2), [#allocation3], %s742_s29  ;;  %s167_s6 = scalar_lea.vmem (!%p158_p2), [#allocation2], %s458_s30 }
  0x28   : > { %609 = dma.done.wait (%p699_p6), %s164_s4, 1024  }
  0x29   : > { %611 = vsyncadd (%p699_p6), %s164_s4, 4294966272  ;;  %v752_v0 = vld [vmem:[%s167_s6] sm:$0xff]  ;;  %v754_v1 = vld [vmem:[%s167_s6 + $0x8] sm:$0xff]  ;;  %vm235_vm0 = vcmask 261120   ;;  %vm266_vm1 = vcmask 64512   ;;  %v220_v16 = vlaneseq  ;;  %vm225_vm2 = vcmask 130112  }
  0x2a   : > { %v756_v2 = vld [vmem:[%s167_s6 + $0x20] sm:$0xff]  ;;  %v199_v3 = vadd.f32 %v754_v1, %v752_v0  ;;  %v760_v4 = vld [vmem:[%s167_s6 + $0x28] sm:$0xff]  ;;  %v764_v6 = vld [vmem:[%s167_s6 + $0x10] sm:$0xff]  ;;  %vm229_vm3 = vcmask 195712   ;;  %vm233_vm4 = vcmask 261312   ;;  %s190_s22 = scalar_lea.vmem [#allocation5], %s458_s30 }
  0x2b   : > { %v205_v5 = vadd.f32 %v760_v4, %v756_v2  ;;  %v766_v7 = vld [vmem:[%s167_s6 + $0x18] sm:$0xff]  ;;  %v768_v8 = vld [vmem:[%s167_s6 + $0x30] sm:$0xff]  ;;  %v215_v12 = vld [vmem:[%s842_s1] sm:$0xff]  ;;  %v221_v19 = vand.u32 127, %v220_v16  ;;  %v323_v39 = vshrl.u32 %v220_v16, 7  ;;  %s474_s27 = sshll.u32 %s677_s16, 6 }
  0x2c   : > { %200 = vadd.xlane.f32.xlu0 %v199_v3  ;;  %v770_v9 = vld [vmem:[%s167_s6 + $0x38] sm:$0xff]  ;;  %v202_v10 = vadd.f32 %v766_v7, %v764_v6  ;;  %460 = vmatpush.xpose.msk.msra.mxu0 %vm235_vm0, %v215_v12  ;;  %v264_v14 = vld [vmem:[%s843_s2 + $0x10] sm:$0xff]  ;;  %v263_v15 = vld [vmem:[%s843_s2 + $0x8] sm:$0xff]  ;;  %s374_s4 = scalar_lea.hbm %s844_s3, %s474_s27  ;;  %s375_s6 = sshll.u32 %s190_s22, 4  ;;  %s376_s6 = int_to_ptr.vmem [resolvable:$true] %s375_s6 }
  0x2d   : > { %206 = vadd.xlane.f32.xlu1 %v205_v5  ;;  %v208_v11 = vadd.f32 %v770_v9, %v768_v8  ;;  %v265_v13 = vld [vmem:[%s843_s2 + $0x18] sm:$0xff]  ;;  %v223_v21 = vadd.s32 4294967288, %v221_v19  ;;  %v227_v22 = vadd.s32 4294967280, %v221_v19  ;;  %v231_v25 = vadd.s32 4294967272, %v221_v19  ;;  %v262_v36 = vld [vmem:[%s843_s2] sm:$0xff]  ;;  %525 = vset.pattern.permute.xlu2 %v323_v39  ;;  %s377_s23 = sshll.u32 %s374_s4, 4  ;;  %s378_s23 = int_to_ptr.hbm [resolvable:$true] %s377_s23 }
  0x2e   : > { %462 = vmatpush.xpose.msk.msra.mxu1 %vm266_vm1, %v265_v13  ;;  %v342_v40 = vadd.s32 24, %v323_v39  ;;  %v336_v41 = vadd.s32 16, %v323_v39  ;;  %v330_v57 = vadd.s32 8, %v323_v39  ;;  %s363_s16 = scalar_lea.sflag [#allocation4], %s742_s29  ;;  %s578_s30 = sshra.s32 %s378_s23, 4  ;;  %s579_s30 = int_to_ptr.hbm [resolvable:$true] %s578_s30 }
  0x2f   : > { %s580_s5 = scalar_lea.hbm %s579_s30, 64  ;;  %s584_s9 = scalar_lea.hbm %s844_s3, 128 }
  0x30   : > { %528 = vset.pattern.permute.xlu1 %v342_v40  ;;  %527 = vset.pattern.permute.xlu0 %v336_v41  ;;  %p581_p6 = scmp.ne.s32.totalorder %s579_s30, %s580_s5  ;;  %p585_p0 = scmp.lt.s32.totalorder %s579_s30, %s844_s3 }
  0x31   : > { %p586_p1 = scmp.lt.s32.totalorder %s584_s9, %s580_s5 }
  0x32   : > { %463 = vmatpush.xpose.msk.msra.mxu1 %vm266_vm1, %v264_v14  ;;  %p582_p9 = pnand %p581_p6, %p706_p11 }
  0x33   : > { %p587_p3 = por %p586_p1, %p585_p0 }
  0x34   : > { %203 = vadd.xlane.f32.xlu0 %v202_v10  ;;  %p583_p13 = pneg %p582_p9 }
  0x35   : > { %209 = vadd.xlane.f32.xlu1 %v208_v11 }
  0x36   : > { %464 = vmatpush.xpose.msk.msra.mxu1 %vm266_vm1, %v263_v15  ;;  %p588_p4 = pnand %p587_p3, %p583_p13 }
  0x3a   : > { %465 = vmatpush.xpose.msk.msra.mxu1 %vm266_vm1, %v262_v36 }
  0x9f   : > { %v201_v17 = vpop.xlane.xlu0 %200 }
  0xa0   : > { %v207_v18 = vpop.xlane.xlu1 %206  ;;  %v211_v20 = vmul.f32 0.00390625, %v201_v17 }
  0xa1   : > { %v213_v23 = vmul.f32 0.00390625, %v207_v18 }
  0xa2   : > { %v222_v29 = vperm.slane %v211_v20, %v221_v19 }
  0xa3   : > { %v228_v31 = vperm.slane %v213_v23, %v227_v22 }
  0xa7   : > { %v204_v24 = vpop.xlane.xlu0 %203 }
  0xa8   : > { %v212_v26 = vmul.f32 0.00390625, %v204_v24  ;;  %v210_v27 = vpop.xlane.xlu1 %209 }
  0xa9   : > { %v214_v28 = vmul.f32 0.00390625, %v210_v27 }
  0xaa   : > { %v224_v30 = vperm.slane %v212_v26, %v223_v21 }
  0xab   : > { %v232_v32 = vperm.slane %v214_v28, %v231_v25 }
  0xac   : > { %v226_v33 = vsel %vm225_vm2, %v224_v30, %v222_v29 }
  0xad   : > { %v230_v34 = vsel %vm229_vm3, %v228_v31, %v226_v33 }
  0xae   : > { %v234_v35 = vsel %vm233_vm4, %v232_v32, %v230_v34 }
  0xaf   : > { %461 = vmatmul.msk.f32.vlgmr.msra.gmra.mxu0 %vm235_vm0, %v234_v35 }
 0x12c   : > { %v258_v37 = vpop.f32.mrf.mxu0 }
 0x12d   : > { %v261_v38 = vmax.f32 %v258_v37, 0.0 }
 0x12f   : > { %466 = vmatmul.msk.f32.vlgmr.msra.gmra.mxu1 %vm266_vm1, %v261_v38 }
 0x1ac   : > { %v299_v42 = vpop.f32.mrf.mxu1 }
 0x1ad   : > { %v467_v43 = vmul.f32 -1.442695, %v299_v42 }
 0x1af   : > { %530 = vpow2.f32 %v467_v43 }
 0x1b5   : > { %v531_v44 = vpop.eup %530 }
 0x1b6   : > { %v305_v45 = vadd.f32 1.0, %v531_v44 }
 0x1b8   : > { %532 = vrcp.f32 %v305_v45  ;;  %v317_v49 = vand.u32 2147483648, %v305_v45  ;;  %v315_v51 = vand.u32 2147483647, %v305_v45  ;;  %vm311_vm6 = vweird.f32 %v305_v45 }
 0x1ba   : > { %v318_v53 = vor.u32 1.1754944e-38, %v317_v49  ;;  %vm316_vm8 = vcmp.eq.f32.partialorder %v315_v51, 8.507059e+37 }
 0x1be   : > { %v533_v46 = vpop.eup %532 }
 0x1bf   : > { %v307_v47 = vmul.f32 %v533_v46, %v305_v45  ;;  %vm312_vm5 = vweird.f32 %v533_v46 }
 0x1c0   : > { %vm313_vm7 = vmor %vm311_vm6, %vm312_vm5 }
 0x1c1   : > { %v308_v48 = vsub.f32 1.0, %v307_v47 }
 0x1c3   : > { %v309_v50 = vmul.f32 %v533_v46, %v308_v48 }
 0x1c5   : > { %v310_v52 = vadd.f32 %v533_v46, %v309_v50 }
 0x1c7   : > { %v314_v54 = vsel %vm313_vm7, %v533_v46, %v310_v52 }
 0x1c8   : > { %v319_v55 = vsel %vm316_vm8, %v318_v53, %v314_v54 }
 0x1c9   : > { %v321_v56 = vperm.slane %v319_v55, 0 }
 0x1cb   : > { %344 = vperm.xlu1 %528, %v321_v56   ;;  %338 = vperm.xlu0 %527, %v321_v56  }
 0x1cc   : > { %326 = vperm.xlu2 %525, %v321_v56  }
 0x1d3   : > { %529 = vset.pattern.permute.xlu0 %v342_v40 }
 0x1d4   : > { %526 = vset.pattern.permute.xlu2 %v330_v57 }
 0x1dc   : > { %332 = vperm.xlu2 %526, %v321_v56  }
 0x226   : > { %v327_v58 = vpop.permute.xlu2 %326 }
 0x227   : > { %v346_v59 = vmul.f32 %v327_v58, %v752_v0  ;;  %v347_v60 = vmul.f32 %v327_v58, %v754_v1 }
 0x229   : > { %354 = vst [vmem:[%s190_s22] sm:$0xff] %v346_v59 }
 0x22a   : > { %355 = vst [vmem:[%s190_s22 + $0x8] sm:$0xff] %v347_v60 }
 0x236   : > { %v333_v61 = vpop.permute.xlu2 %332 }
 0x237   : > { %v348_v62 = vmul.f32 %v333_v61, %v764_v6  ;;  %v349_v63 = vmul.f32 %v333_v61, %v766_v7 }
 0x239   : > { %356 = vst [vmem:[%s190_s22 + $0x10] sm:$0xff] %v348_v62 }
 0x23a   : > { %357 = vst [vmem:[%s190_s22 + $0x18] sm:$0xff] %v349_v63 }
 0x23d   : > { %v345_v0 = vpop.permute.xlu1 %344  ;;  %v339_v1 = vpop.permute.xlu0 %338 }
 0x23e   : > { %v352_v3 = vmul.f32 %v345_v0, %v768_v8  ;;  %v353_v5 = vmul.f32 %v345_v0, %v770_v9  ;;  %v350_v6 = vmul.f32 %v339_v1, %v756_v2  ;;  %v351_v7 = vmul.f32 %v339_v1, %v760_v4 }
 0x240   : > { %360 = vst [vmem:[%s190_s22 + $0x30] sm:$0xff] %v352_v3 }
 0x241   : > { %361 = vst [vmem:[%s190_s22 + $0x38] sm:$0xff] %v353_v5 }
 0x242   : > { %358 = vst [vmem:[%s190_s22 + $0x20] sm:$0xff] %v350_v6 }
 0x243   : > { %359 = vst [vmem:[%s190_s22 + $0x28] sm:$0xff] %v351_v7 }
 0x244   : > { %591 = shalt.err (!%p588_p4)
}
 0x245   : > { %s634_s29 = smov 256   ;;  %s635_s17 = smov 16  }
 0x246   : > { %477 = dma.vmem_to_hbm [thread:$0]  (%p706_p11), %s376_s6, 1024, %s378_s23, %s363_s16, %s634_s29, %s634_s29, %s635_s17  }
 0x247 PF: > { %s392_s19 = sand.u32 1, %s618_s12   ;;  %p850_p7 = scmp.ge.s32.totalorder %s630_s15, 2 }
 0x248   : > { %s393_s20 = scalar_lea.sflag [#allocation4], %s392_s19 }
 0x249   : > { %p484_p5 = pnand %p850_p7, %p710_p12 }
 0x24b   : > { %p485_p8 = pneg %p484_p5 }
 0x24d   : > { %613 = dma.done.wait (%p485_p8), %s393_s20, 1024  }
 0x24e   : > { %615 = vsyncadd (%p485_p8), %s393_s20, 4294966272  ;;  %p16_p10 = scmp.ge.s32.totalorder %s681_s18, 4   ;;  %s851_s12 = smov %s622_s13 }
 0x24f   : > { %s852_s13 = smov %s626_s14  ;;  %s853_s14 = smov %s693_s21 }
 0x250   : > { %s854_s15 = smov %s681_s18  ;;  %18 = sbr.rel (!%p16_p10) target bundleno = 5 (0x5), region = 77 }
 0x255   :  { %399 = vsyncpa [#allocation3], 1 }
 0x256   :  { %401 = vsyncpa [#allocation3 + $0x1], 1 }
 0x257   :  { %402 = vsyncpa [#allocation4], 1 }
 0x258   :  { %404 = vsyncpa [#allocation4 + $0x1], 1 }

</bundles_post_ra>
